<compile_context>
chip_gen: v7x
topology: tpu7x:2x2x1
jax: 0.10.0
libtpu: 0.0.40
codegen_flags: <defaults>
</compile_context>

<pallas_src>
import jax
import jax.numpy as jnp
from jax import lax
from jax.experimental import pallas as pl
from jax.experimental.pallas import tpu as pltpu

COS_EPS = 1e-8      # eps used by F.cosine_similarity (clamp on the norm)
SCORE_EPS = 1e-8    # eps added in score_func


# ----------------------------------------------------------------------------- kernel
def _classifier_kernel(offset_ref, emb_ref, anch_ref, inv_e_ref, out_ref, acc_ref):
    # offset_ref: (1,) f32 in SMEM
    # emb_ref:    (TM, TK) mm_dtype      anch_ref: (TN, TK) mm_dtype (pre-normalized, pre-scaled)
    # inv_e_ref:  (TM, 1)  f32           out_ref:  (TM, TN) f32
    # acc_ref:    (TM, TN) f32 VMEM scratch (accumulator across the K axis)
    k = pl.program_id(2)

    @pl.when(k == 0)
    def _():
        acc_ref[...] = jnp.zeros_like(acc_ref)

    # All-pairs partial dot product on the MXU, contracting the shared D axis directly
    # (no transposed copy of the anchors tile).
    acc_ref[...] += lax.dot_general(
        emb_ref[...], anch_ref[...],
        dimension_numbers=(((1,), (1,)), ((), ())),
        preferred_element_type=jnp.float32,
    )

    @pl.when(k == pl.num_programs(2) - 1)
    def _():
        # anchors already carry 1/||a|| * (0.5/temp); finish with the emb inverse norm
        # and the additive constant ((0.5 + eps)/temp).
        out_ref[...] = (acc_ref[...] * inv_e_ref[...] + offset_ref[0]).astype(out_ref.dtype)


# ----------------------------------------------------------------------------- helpers
def _ceil_to(n, m):
    return ((n + m - 1) // m) * m


def _cdiv(a, b):
    return (a + b - 1) // b


def _vmem_capacity_bytes():
    try:
        info = pltpu.get_tpu_info()
        cap = int(getattr(info, "vmem_capacity_bytes", 0))
        if cap > 0:
            return cap
    except Exception:
        pass
    return 64 * 1024 * 1024  # conservative fallback (valid on every generation)


def _pick_tiles(B, C, D, itemsize, budget):
    tm = min(_ceil_to(max(B, 1), 8), 512)
    tn = min(_ceil_to(max(C, 1), 128), 1024)

    # Keep >=2 tiles along the class axis when the batch fits in one row tile so the
    # class axis still splits across v7x's two TensorCores (harmless elsewhere).
    c128 = _ceil_to(max(C, 1), 128)
    if c128 >= 256 and B <= tm:
        tn = min(tn, _ceil_to(_cdiv(c128, 2), 128))

    def fits(a, b, c):
        # double-buffered emb + anchor tiles, inv-norm column,
        # double-buffered f32 output tile + f32 accumulator scratch
        return (2 * (a + b) * c * itemsize + 2 * a * 4 + 3 * a * b * 4) <= budget

    tk = D
    if not fits(tm, tn, tk):
        # K-tile the contraction first so TM/TN (MXU shapes, anchor HBM reuse) stay big.
        t = 128
        while t * 2 <= _ceil_to(D, 128) and fits(tm, tn, t * 2):
            t *= 2
        tk = t
    while not fits(tm, tn, tk) and tn > 128:
        tn = max(128, _ceil_to(tn // 2, 128))
    while not fits(tm, tn, tk) and tm > 8:
        tm = max(8, _ceil_to(tm // 2, 8))
    return tm, tn, tk


# ----------------------------------------------------------------------------- wrapper
def classifier_forward(emb, anchors, temp, *, tm=None, tn=None, tk=None, mxu_dtype=None):
    """emb: (B, D), anchors: (C, D) -> (B, C) f32 scores, matching the PyTorch module."""
    B, D = emb.shape
    C, Da = anchors.shape
    assert D == Da, "embedding dim mismatch"

    f32 = jnp.float32
    temp = jnp.asarray(temp, f32)                      # traced -> no recompile when temp changes
    scale = 0.5 / temp
    offset = jnp.reshape((0.5 + SCORE_EPS) / temp, (1,)).astype(f32)

    # MXU operand dtype.  For f32 inputs on v6e/v7x, passing mxu_dtype=jnp.bfloat16
    # roughly quadruples MXU throughput at ~1e-3 accuracy cost.
    if mxu_dtype is not None:
        mm_dtype = jnp.dtype(mxu_dtype)
    else:
        mm_dtype = emb.dtype if emb.dtype == anchors.dtype else f32

    # Fold the anchor normalization AND the multiplicative score constant into the
    # weights once per call (rsqrt(max(ss, eps^2)) == 1/max(norm, eps)).
    a32 = anchors.astype(f32)
    inv_a = lax.rsqrt(jnp.maximum(jnp.sum(a32 * a32, axis=-1, keepdims=True),
                                  COS_EPS * COS_EPS))
    anchors_mm = (a32 * inv_a * scale).astype(mm_dtype)            # (C, D)

    # Emb inverse norms hoisted out of the kernel (computed once, not per class tile).
    e32 = emb.astype(f32)
    inv_e = lax.rsqrt(jnp.maximum(jnp.sum(e32 * e32, axis=-1, keepdims=True),
                                  COS_EPS * COS_EPS))              # (B, 1)
    emb_mm = emb.astype(mm_dtype)

    # Generation-aware VMEM budget and tile selection.
    itemsize = jnp.dtype(mm_dtype).itemsize
    vmem_cap = _vmem_capacity_bytes()                  # 128 MiB v5e/v6e, 64 MiB v7x
    usable = int(vmem_cap * 0.8)                       # leave headroom for compiler scratch
    budget = max(usable - 4 * 1024 * 1024, 16 * 1024 * 1024)

    TM, TN, TK = _pick_tiles(B, C, D, itemsize, budget)
    if tm is not None:
        TM = tm
    if tn is not None:
        TN = tn
    if tk is not None:
        TK = tk

    Bp = _ceil_to(B, TM)
    Cp = _ceil_to(C, TN)
    Dp = _ceil_to(D, TK) if TK != D else D

    if Bp != B or Dp != D:
        emb_mm = jnp.pad(emb_mm, ((0, Bp - B), (0, Dp - D)))
    if Bp != B:
        inv_e = jnp.pad(inv_e, ((0, Bp - B), (0, 0)))
    if Cp != C or Dp != D:
        anchors_mm = jnp.pad(anchors_mm, ((0, Cp - C), (0, Dp - D)))

    grid = (Bp // TM, Cp // TN, Dp // TK)

    out_p = pl.pallas_call(
        _classifier_kernel,
        out_shape=jax.ShapeDtypeStruct((Bp, Cp), f32),
        grid_spec=pltpu.PrefetchScalarGridSpec(
            num_scalar_prefetch=0,
            grid=grid,
            in_specs=[
                pl.BlockSpec(memory_space=pltpu.MemorySpace.SMEM),      # offset scalar
                pl.BlockSpec((TM, TK), lambda i, j, k: (i, k)),         # emb tile
                pl.BlockSpec((TN, TK), lambda i, j, k: (j, k)),         # pre-scaled anchors
                pl.BlockSpec((TM, 1), lambda i, j, k: (i, 0)),          # 1/||emb|| column
            ],
            out_specs=pl.BlockSpec((TM, TN), lambda i, j, k: (i, j)),
            scratch_shapes=[pltpu.VMEM((TM, TN), jnp.float32)],
        ),
        compiler_params=pltpu.CompilerParams(
            dimension_semantics=("parallel", "parallel", "arbitrary"),
            vmem_limit_bytes=max(usable, 32 * 1024 * 1024),
        ),
    )(offset, emb_mm, anchors_mm, inv_e)

    return out_p[:B, :C]


# ----------------------------------------------------------------------------- reference
def _reference(emb, anchors, temp):
    # Pure-JAX reference mirroring the PyTorch semantics.
    x = anchors[None, :, :].astype(jnp.float32)   # (1, C, D)
    y = emb[:, None, :].astype(jnp.float32)       # (B, 1, D)
    dot = jnp.sum(x * y, axis=-1)
    xn = jnp.maximum(jnp.linalg.norm(x, axis=-1), COS_EPS)
    yn = jnp.maximum(jnp.linalg.norm(y, axis=-1), COS_EPS)
    cos = dot / (xn * yn)
    return ((1.0 + cos) / 2.0 + SCORE_EPS) / temp


if __name__ == "__main__":
    key = jax.random.PRNGKey(0)
    k_anchor, k_emb, k_anchor2, k_emb2 = jax.random.split(key, 4)

    temp = 0.07  # args.temp

    # Case 1: small, deliberately non-aligned shapes (padding path, single tile).
    B, C, D = 10, 20, 128
    anchors = jax.random.normal(k_anchor, (C, D), dtype=jnp.float32)  # nn.Parameter(anchors)
    emb = jax.random.normal(k_emb, (B, D), dtype=jnp.float32)
    out = jax.block_until_ready(classifier_forward(emb, anchors, temp))
    ref = _reference(emb, anchors, temp)
    assert out.shape == (B, C)
    assert jnp.allclose(out, ref, atol=1e-3, rtol=1e-3), "mismatch vs reference (case 1)"

    # Case 2: non-128-multiple D and >1 class tile (exercises the 2-D tiling path).
    B2, C2, D2 = 48, 300, 160
    anchors2 = jax.random.normal(k_anchor2, (C2, D2), dtype=jnp.float32)
    emb2 = jax.random.normal(k_emb2, (B2, D2), dtype=jnp.float32)
    out2 = jax.block_until_ready(classifier_forward(emb2, anchors2, temp))
    ref2 = _reference(emb2, anchors2, temp)
    assert out2.shape == (B2, C2)
    assert jnp.allclose(out2, ref2, atol=1e-3, rtol=1e-3), "mismatch vs reference (case 2)"

    # TODO(synk): consider mxu_dtype=jnp.bfloat16 for f32 inputs on v6e/v7x when the
    # op is MXU-bound and ~1e-3 accuracy loss is acceptable.

    print("KERNEL_OK")
</pallas_src>

<mosaic_0001>
module attributes {stable_mosaic.version = 11 : i64} {
  func.func @_classifier_kernel(%arg0: i32, %arg1: i32, %arg2: i32, %arg3: memref<1xf32, #tpu.memory_space<smem>>, %arg4: memref<16x128xf32, #tpu.memory_space<vmem>>, %arg5: memref<128x128xf32, #tpu.memory_space<vmem>>, %arg6: memref<16x1xf32, #tpu.memory_space<vmem>>, %arg7: memref<16x128xf32, #tpu.memory_space<vmem>>, %arg8: memref<16x128xf32, #tpu.memory_space<vmem>>) attributes {dimension_semantics = [#tpu.dimension_semantics<parallel>, #tpu.dimension_semantics<parallel>, #tpu.dimension_semantics<arbitrary>], iteration_bounds = array<i64: 1, 1, 1>, scalar_prefetch = 0 : i64, scratch_operands = 1 : i64, tpu.core_type = #tpu.core_type<tc>, window_params = [{transform_indices = @transform_0, window_bounds = array<i64: 1>}, {transform_indices = @transform_1, window_bounds = array<i64: 16, 128>}, {transform_indices = @transform_2, window_bounds = array<i64: 128, 128>}, {transform_indices = @transform_3, window_bounds = array<i64: 16, 1>}, {transform_indices = @transform_4, window_bounds = array<i64: 16, 128>}]} {
    %c0_i32 = arith.constant 0 : i32
    %0 = arith.cmpi eq, %arg2, %c0_i32 : i32
    %1 = arith.extui %0 : i1 to i32
    %c0_i32_0 = arith.constant 0 : i32
    %2 = arith.cmpi ne, %1, %c0_i32_0 : i32
    scf.if %2 {
      %cst_10 = arith.constant 0.000000e+00 : f32
      %12 = vector.broadcast %cst_10 : f32 to vector<16x128xf32>
      %c0_11 = arith.constant 0 : index
      %c0_12 = arith.constant 0 : index
      %13 = vector.load %arg8[%c0_11, %c0_12] : memref<16x128xf32, #tpu.memory_space<vmem>>, vector<16x128xf32>
      tpu.vector_store %arg8[%c0_11, %c0_12], %12 {strides = array<i32>} : memref<16x128xf32, #tpu.memory_space<vmem>>, vector<16x128xf32>,
    } else {
    }
    %c0 = arith.constant 0 : index
    %c0_1 = arith.constant 0 : index
    %3 = vector.load %arg8[%c0, %c0_1] : memref<16x128xf32, #tpu.memory_space<vmem>>, vector<16x128xf32>
    %c0_2 = arith.constant 0 : index
    %c0_3 = arith.constant 0 : index
    %4 = vector.load %arg4[%c0_2, %c0_3] : memref<16x128xf32, #tpu.memory_space<vmem>>, vector<16x128xf32>
    %c0_4 = arith.constant 0 : index
    %c0_5 = arith.constant 0 : index
    %5 = vector.load %arg5[%c0_4, %c0_5] : memref<128x128xf32, #tpu.memory_space<vmem>>, vector<128x128xf32>
    %cst = arith.constant dense<0.000000e+00> : vector<16x128xf32>
    %6 = tpu.matmul %4, %5, %cst {dimension_numbers = #tpu.dot_dimension_numbers<[1], [1], [0], [0], [0, 0, 1, 0], [], []>} : vector<16x128xf32>, vector<128x128xf32>, vector<16x128xf32> -> vector<16x128xf32>
    %7 = arith.addf %3, %6 : vector<16x128xf32>
    %c0_6 = arith.constant 0 : index
    %c0_7 = arith.constant 0 : index
    %8 = vector.load %arg8[%c0_6, %c0_7] : memref<16x128xf32, #tpu.memory_space<vmem>>, vector<16x128xf32>
    tpu.vector_store %arg8[%c0_6, %c0_7], %7 {strides = array<i32>} : memref<16x128xf32, #tpu.memory_space<vmem>>, vector<16x128xf32>,
    %c0_i32_8 = arith.constant 0 : i32
    %9 = arith.cmpi eq, %arg2, %c0_i32_8 : i32
    %10 = arith.extui %9 : i1 to i32
    %c0_i32_9 = arith.constant 0 : i32
    %11 = arith.cmpi ne, %10, %c0_i32_9 : i32
    scf.if %11 {
      %c0_10 = arith.constant 0 : index
      %c0_11 = arith.constant 0 : index
      %12 = vector.load %arg8[%c0_10, %c0_11] : memref<16x128xf32, #tpu.memory_space<vmem>>, vector<16x128xf32>
      %c0_12 = arith.constant 0 : index
      %c0_13 = arith.constant 0 : index
      %13 = vector.load %arg6[%c0_12, %c0_13] : memref<16x1xf32, #tpu.memory_space<vmem>>, vector<16x1xf32>
      %14 = vector.broadcast %13 : vector<16x1xf32> to vector<16x128xf32>
      %15 = arith.mulf %12, %14 : vector<16x128xf32>
      %c0_14 = arith.constant 0 : index
      %16 = memref.load %arg3[%c0_14] : memref<1xf32, #tpu.memory_space<smem>>
      %17 = vector.broadcast %16 : f32 to vector<16x128xf32>
      %18 = arith.addf %15, %17 : vector<16x128xf32>
      %c0_15 = arith.constant 0 : index
      %c0_16 = arith.constant 0 : index
      %19 = vector.load %arg7[%c0_15, %c0_16] : memref<16x128xf32, #tpu.memory_space<vmem>>, vector<16x128xf32>
      tpu.vector_store %arg7[%c0_15, %c0_16], %18 {strides = array<i32>} : memref<16x128xf32, #tpu.memory_space<vmem>>, vector<16x128xf32>,
    } else {
    }
    return
  }
  func.func @transform_0(%arg0: i32, %arg1: i32, %arg2: i32) -> i32 {
    %c0_i32 = arith.constant 0 : i32
    %c0_i32_0 = arith.constant 0 : i32
    return %c0_i32 : i32
  }
  func.func @transform_1(%arg0: i32, %arg1: i32, %arg2: i32) -> (i32, i32) {
    %c0_i32 = arith.constant 0 : i32
    return %arg0, %arg2 : i32, i32
  }
  func.func @transform_2(%arg0: i32, %arg1: i32, %arg2: i32) -> (i32, i32) {
    %c0_i32 = arith.constant 0 : i32
    return %arg1, %arg2 : i32, i32
  }
  func.func @transform_3(%arg0: i32, %arg1: i32, %arg2: i32) -> (i32, i32) {
    %c0_i32 = arith.constant 0 : i32
    %c0_i32_0 = arith.constant 0 : i32
    return %arg0, %c0_i32 : i32, i32
  }
  func.func @transform_4(%arg0: i32, %arg1: i32, %arg2: i32) -> (i32, i32) {
    %c0_i32 = arith.constant 0 : i32
    return %arg0, %arg1 : i32, i32
  }
}

</mosaic_0001>

<bundles_post_ra>
// kernel: tpu_custom_call.1
= control target key start
LH: loop header
LB: loop body
LE: loop exit
PB: predicated region body
PF: predicated region fallthrough
CT: control target
= control target key end

     0   :  { %10 = vsyncpa [#allocation5], 0  ;;  %s394_s0 = inlined_call_operand.<no memory space> [shape: f32[1], index: 0, kind: input, shape index: {}]   ;;  %s395_s1 = inlined_call_operand.vmem [shape: f32[16,128], index: 1, kind: input, shape index: {}]   ;;  %s396_s2 = inlined_call_operand.hbm [shape: f32[128,128], index: 2, kind: input, shape index: {}]   ;;  %s397_s3 = inlined_call_operand.vmem [shape: f32[16,1], index: 3, kind: input, shape index: {}]   ;;  %s398_s4 = inlined_call_operand.hbm [shape: f32[16,128], index: 4, kind: output, shape index: {}]  }
   0x1   :  { %11 = vsyncpa [#allocation6], 0  ;;  %s319_s15 = smov [#allocation4]   ;;  %s271_s19 = scalar_lea.hbm %s396_s2, 2048 }
   0x2   :  { %s21_s16 = sshll.u32 %s319_s15, 4  ;;  %p272_p0 = scmp.ne.s32.totalorder %s396_s2, %s271_s19  ;;  %s22_s16 = int_to_ptr.vmem [resolvable:$true] %s21_s16 }
   0x3   :  { %p275_p1 = scmp.lt.u32.totalorder %s271_s19, %s396_s2 }
   0x5   :  { %p277_p2 = pnand %p275_p1, %p272_p0 }
   0x7   :  { %280 = shalt.err (!%p277_p2)
}
   0x8   :  { %s281_s24 = scalar_lea.vmem %s22_s16, 2048  ;;  %p286_p4 = scmp.lt.s32.totalorder %s22_s16, %s22_s16 }
   0x9   :  { %p282_p3 = scmp.ne.s32.totalorder %s22_s16, %s281_s24  ;;  %p287_p5 = scmp.lt.s32.totalorder %s281_s24, %s281_s24 }
   0xb   :  { %p288_p6 = por %p287_p5, %p286_p4 }
   0xd   :  { %p289_p7 = pnand %p288_p6, %p282_p3 }
   0xf   :  { %292 = shalt.err (!%p289_p7)
}
  0x10   :  { %s320_s25 = smov 128   ;;  %s321_s26 = smov 8  }
  0x11   :  { %27 = dma.hbm_to_vmem [thread:$0]  %s396_s2, 2048, %s22_s16, [#allocation5], %s320_s25, %s320_s25, %s321_s26  }
  0x12   :  { %315 = dma.done.wait [#allocation5], 2048  }
  0x13   :  { %316 = vsyncadd [#allocation5], 4294965248  ;;  %v322_v0 = vmov 0   ;;  %v43_v1 = vld [vmem:[#allocation4] sm:$0xff]  ;;  %v44_v2 = vld [vmem:[#allocation4 + $0x8] sm:$0xff]  ;;  %v158_v32 = vstv %s394_s0  ;;  %s323_s11 = smov [#allocation7]  }
  0x14   :  { %270 = vset.pattern.permute.xlu0 %v322_v0  ;;  %v45_v3 = vld [vmem:[#allocation4 + $0x10] sm:$0xff]  ;;  %v233_v4 = vpack.c.bf16 %v44_v2, %v43_v1  ;;  %v46_v5 = vld [vmem:[#allocation4 + $0x18] sm:$0xff]  ;;  %v41_v7 = vld [vmem:[%s395_s1] sm:$0xff]  ;;  %s168_s12 = sshll.u32 %s323_s11, 4  ;;  %s169_s12 = int_to_ptr.vmem [resolvable:$true] %s168_s12 }
  0x15   :  { %v237_v6 = vpack.c.bf16 %v46_v5, %v45_v3  ;;  %v47_v8 = vld [vmem:[#allocation4 + $0x20] sm:$0xff]  ;;  %v48_v9 = vld [vmem:[#allocation4 + $0x28] sm:$0xff]  ;;  %230 = vmatprep.mubr.f32.mxu0 %v41_v7  ;;  %v49_v13 = vld [vmem:[#allocation4 + $0x30] sm:$0xff]  ;;  %s293_s13 = scalar_lea.vmem %s169_s12, 256  ;;  %p298_p9 = scmp.lt.s32.totalorder %s169_s12, %s169_s12 }
  0x16   :  { %234 = vmatprep.subr.bf16.mxu0 %v233_v4  ;;  %v143_v10 = vld [vmem:[%s397_s3] sm:$0xff]  ;;  %v144_v11 = vld [vmem:[%s397_s3 + $0x8] sm:$0xff]  ;;  %v241_v12 = vpack.c.bf16 %v48_v9, %v47_v8  ;;  %v50_v14 = vld [vmem:[#allocation4 + $0x38] sm:$0xff]  ;;  %p294_p8 = scmp.ne.s32.totalorder %s169_s12, %s293_s13  ;;  %p299_p10 = scmp.lt.s32.totalorder %s293_s13, %s293_s13 }
  0x17   :  { %236 = vmatpush3.bf16.xpose.msra.mxu0 %v233_v4  ;;  %147 = vperm.xlu0 %270, %v143_v10   ;;  %v245_v15 = vpack.c.bf16 %v50_v14, %v49_v13  ;;  %v51_v16 = vld [vmem:[#allocation4 + $0x40] sm:$0xff]  ;;  %v52_v17 = vld [vmem:[#allocation4 + $0x48] sm:$0xff]  ;;  %v53_v19 = vld [vmem:[#allocation4 + $0x50] sm:$0xff] }
  0x18   :  { %238 = vmatprep.subr.bf16.mxu0 %v237_v6  ;;  %v249_v18 = vpack.c.bf16 %v52_v17, %v51_v16  ;;  %v54_v20 = vld [vmem:[#allocation4 + $0x58] sm:$0xff]  ;;  %v55_v22 = vld [vmem:[#allocation4 + $0x60] sm:$0xff]  ;;  %v56_v23 = vld [vmem:[#allocation4 + $0x68] sm:$0xff]  ;;  %p300_p11 = por %p299_p10, %p298_p9 }
  0x19   :  { %v253_v21 = vpack.c.bf16 %v54_v20, %v53_v19  ;;  %v257_v24 = vpack.c.bf16 %v56_v23, %v55_v22  ;;  %v57_v25 = vld [vmem:[#allocation4 + $0x70] sm:$0xff]  ;;  %v58_v26 = vld [vmem:[#allocation4 + $0x78] sm:$0xff]  ;;  %v42_v28 = vld [vmem:[%s395_s1 + $0x8] sm:$0xff] }
  0x1a   :  { %v261_v27 = vpack.c.bf16 %v58_v26, %v57_v25  ;;  %p301_p12 = pnand %p300_p11, %p294_p8 }
  0x1b   :  { %152 = vperm.xlu0 %270, %v144_v11  }
  0x1f   :  { %240 = vmatpush3.bf16.xpose.msra.mxu0 %v237_v6 }
  0x20   :  { %242 = vmatprep.subr.bf16.mxu0 %v241_v12 }
  0x27   :  { %244 = vmatpush3.bf16.xpose.msra.mxu0 %v241_v12 }
  0x28   :  { %246 = vmatprep.subr.bf16.mxu0 %v245_v15 }
  0x2f   :  { %248 = vmatpush3.bf16.xpose.msra.mxu0 %v245_v15 }
  0x30   :  { %250 = vmatprep.subr.bf16.mxu0 %v249_v18 }
  0x37   :  { %252 = vmatpush3.bf16.xpose.msra.mxu0 %v249_v18 }
  0x38   :  { %254 = vmatprep.subr.bf16.mxu0 %v253_v21 }
  0x3f   :  { %256 = vmatpush3.bf16.xpose.msra.mxu0 %v253_v21 }
  0x40   :  { %258 = vmatprep.subr.bf16.mxu0 %v257_v24 }
  0x47   :  { %260 = vmatpush3.bf16.xpose.msra.mxu0 %v257_v24 }
  0x48   :  { %262 = vmatprep.subr.bf16.mxu0 %v261_v27 }
  0x4f   :  { %264 = vmatpush3.bf16.xpose.msra.mxu0 %v261_v27 }
  0x56   :  { %231 = vmatmul.mubr.f32.vlgmr.msra.gmra.mrb[0].mxu0 %v42_v28 }
  0x96   :  { %v148_v29 = vpop.permute.xlu0 %147 }
  0x9a   :  { %v153_v30 = vpop.permute.xlu0 %152 }
 0x129   :  { %v232_v31 = vpop.f32.mrb[0].mxu0 }
 0x12a   :  { %v156_v33 = vmul.f32 %v232_v31, %v153_v30  ;;  %v125_v34 = vpop.f32.mrb[1].mxu0 }
 0x12b   :  { %v155_v35 = vmul.f32 %v148_v29, %v125_v34 }
 0x12c   :  { %v160_v36 = vadd.f32 %v158_v32, %v156_v33 }
 0x12d   :  { %v159_v37 = vadd.f32 %v158_v32, %v155_v35 }
 0x12e   :  { %162 = vst [vmem:[#allocation7 + $0x8] sm:$0xff] %v160_v36 }
 0x12f   :  { %161 = vst [vmem:[#allocation7] sm:$0xff] %v159_v37 }
 0x130   :  { %304 = shalt.err (!%p301_p12)
}
 0x131   :  { %s305_s0 = scalar_lea.hbm %s398_s4, 256 }
 0x132   :  { %p306_p13 = scmp.ne.s32.totalorder %s398_s4, %s305_s0  ;;  %p309_p0 = scmp.lt.u32.totalorder %s305_s0, %s398_s4 }
 0x134   :  { %p311_p1 = pnand %p309_p0, %p306_p13 }
 0x136   :  { %314 = shalt.err (!%p311_p1)
}
 0x137   :  { %174 = dma.vmem_to_hbm [thread:$0]  %s169_s12, 256, %s398_s4, [#allocation6], %s320_s25, %s320_s25, %s321_s26  }
 0x138   :  { %317 = dma.done.wait [#allocation6], 256  }
 0x139   :  { %318 = vsyncadd [#allocation6], 4294967040 }
 0x13a   :  { %178 = vsyncpa [#allocation5], 1 }
 0x13b   :  { %179 = vsyncpa [#allocation6], 1 }

</bundles_post_ra>
